<compile_context>
chip_gen: v7x
topology: tpu7x:2x2x1
jax: 0.10.0
libtpu: 0.0.40
codegen_flags: <defaults>
</compile_context>

<pallas_src>
import jax
import jax.numpy as jnp
from jax.experimental import pallas as pl
from jax.experimental.pallas import tpu as pltpu

EPS = 1e-5
NUM_HIDDEN = 4              # fc1..fc4, each followed by BN + ReLU
NUM_LAYERS = NUM_HIDDEN + 1  # + classifier


def regression_kernel(x_ref, w_hbm, b_ref, o_ref, wbuf, sem):
    B, P = x_ref.shape

    # Constant reduction matrix: (ones / B) @ [h | h*h] yields BN stats already
    # broadcast over the batch rows.  Single MXU pass; MXU is otherwise idle.
    red = jnp.full((B, B), 1.0 / B, dtype=jnp.float32)

    # Prime the weight double-buffer with layer 0.
    pltpu.make_async_copy(w_hbm.at[0], wbuf.at[0], sem.at[0]).start()

    h = x_ref[...]                                   # (B, P) f32
    for i in range(NUM_LAYERS):
        slot = i & 1
        # Wait for this layer's weights, then immediately start prefetching the
        # next layer's weights into the other slot (overlaps with the matmuls).
        pltpu.make_async_copy(w_hbm.at[i], wbuf.at[slot], sem.at[slot]).wait()
        if i + 1 < NUM_LAYERS:
            nxt = slot ^ 1
            pltpu.make_async_copy(
                w_hbm.at[i + 1], wbuf.at[nxt], sem.at[nxt]).start()

        # Linear.  Hidden-layer biases are dropped: training-mode BN (beta=0)
        # makes a pre-BN per-feature constant a mathematical no-op.
        h = jnp.dot(h, wbuf[slot], preferred_element_type=jnp.float32)

        if i < NUM_HIDDEN:
            # Fused training-mode BatchNorm1d (gamma=1, beta=0) + ReLU.
            # One 256-wide matmul produces [mean | E[h^2]] in a single pass.
            stats = jnp.dot(red, jnp.concatenate([h, h * h], axis=-1),
                            preferred_element_type=jnp.float32)      # (B, 2P)
            mean = stats[0:1, :P]                                     # (1, P)
            var = jnp.maximum(stats[0:1, P:] - mean * mean, 0.0)      # (1, P)
            scale = jax.lax.rsqrt(var + EPS)                          # 1 vreg on EUP
            h = jnp.maximum((h - mean) * scale, 0.0)                  # sublane bcast

    # Classifier: the only bias that survives.  Padded output columns stay 0.
    o_ref[...] = h + b_ref[...]


def regression_forward(x_pad, w_slab, b_cls, out_dim):
    """x_pad: (B, P) lane-dense padded input.  Returns (B, out_dim)."""
    batch, pad_width = x_pad.shape
    vmem = pl.BlockSpec(memory_space=pltpu.MemorySpace.VMEM)
    out_padded = pl.pallas_call(
        regression_kernel,
        out_shape=jax.ShapeDtypeStruct((batch, pad_width), jnp.float32),
        in_specs=[
            vmem,                                # x: tiny, resident in VMEM
            pl.BlockSpec(memory_space=pl.ANY),   # weights: HBM, manual DMA
            vmem,                                # classifier bias row
        ],
        out_specs=vmem,
        scratch_shapes=[
            pltpu.VMEM((2, pad_width, pad_width), jnp.float32),  # weight dbl-buffer
            pltpu.SemaphoreType.DMA((2,)),
        ],
    )(x_pad, w_slab, b_cls)
    return out_padded[:, :out_dim]


def make_params(key, in_dim, hidden_dim, out_dim):
    """PyTorch-like fan_in uniform init; weights stored as (in, out).
    The `direct` Linear exists in the PyTorch __init__ but is unused."""
    h2 = hidden_dim // 2

    def linear(k, fan_in, fan_out):
        kw, kb = jax.random.split(k)
        bound = 1.0 / jnp.sqrt(fan_in)
        w = jax.random.uniform(kw, (fan_in, fan_out), jnp.float32, -bound, bound)
        b = jax.random.uniform(kb, (fan_out,), jnp.float32, -bound, bound)
        return w, b

    keys = jax.random.split(key, 5)
    return [
        linear(keys[0], in_dim, h2),
        linear(keys[1], h2, hidden_dim),
        linear(keys[2], hidden_dim, hidden_dim),
        linear(keys[3], hidden_dim, hidden_dim),
        linear(keys[4], hidden_dim, out_dim),   # classifier
    ]


def pack_params(layers, pad_width):
    """Weights -> one zero-padded (5, P, P) slab.  Only the classifier bias is
    needed in-kernel (hidden-layer biases cancel inside training-mode BN)."""
    n = len(layers)
    w_slab = jnp.zeros((n, pad_width, pad_width), jnp.float32)
    for i, (w, _) in enumerate(layers):
        w_slab = w_slab.at[i, : w.shape[0], : w.shape[1]].set(w)
    b_last = layers[-1][1]
    b_cls = jnp.zeros((1, pad_width), jnp.float32).at[0, : b_last.shape[0]].set(b_last)
    return w_slab, b_cls


def reference_forward(x, layers):
    """Pure-JAX f32 reference matching PyTorch training-mode semantics
    (includes all biases and the two-pass variance)."""
    (w1, b1), (w2, b2), (w3, b3), (w4, b4), (wc, bc) = layers

    def bn_relu(h):
        mean = jnp.mean(h, axis=0, keepdims=True)
        var = jnp.mean((h - mean) ** 2, axis=0, keepdims=True)  # biased var
        return jnp.maximum((h - mean) / jnp.sqrt(var + EPS), 0.0)

    h = bn_relu(x @ w1 + b1)
    h = bn_relu(h @ w2 + b2)
    h = bn_relu(h @ w3 + b3)
    h = bn_relu(h @ w4 + b4)
    return h @ wc + bc


if __name__ == "__main__":
    in_dim, hidden_dim, out_dim = 16, 32, 4
    batch = 8   # must be the true batch size: BN stats divide by the row count

    key = jax.random.PRNGKey(0)
    kx, kp = jax.random.split(key)
    x = jax.random.normal(kx, (batch, in_dim), jnp.float32)
    layers = make_params(kp, in_dim, hidden_dim, out_dim)

    # Lane-dense padded working width (multiple of 128).
    pad_width = 128 * pl.cdiv(max(in_dim, hidden_dim, out_dim), 128)
    x_pad = jnp.zeros((batch, pad_width), jnp.float32).at[:, :in_dim].set(x)
    w_slab, b_cls = pack_params(layers, pad_width)

    out = regression_forward(x_pad, w_slab, b_cls, out_dim)
    out = jax.block_until_ready(out)

    ref = reference_forward(x, layers)
    assert out.shape == (batch, out_dim)
    assert jnp.allclose(out, ref, atol=1e-4, rtol=1e-4)

    print("KERNEL_OK")
</pallas_src>

<mosaic_0001>
module attributes {stable_mosaic.version = 11 : i64} {
  func.func @regression_kernel(%arg0: memref<8x128xf32, #tpu.memory_space<vmem>>, %arg1: memref<5x128x128xf32, #tpu.memory_space<any>>, %arg2: memref<1x128xf32, #tpu.memory_space<vmem>>, %arg3: memref<8x128xf32, #tpu.memory_space<vmem>>, %arg4: memref<2x128x128xf32, #tpu.memory_space<vmem>>, %arg5: memref<2x!tpu.dma_semaphore, #tpu.memory_space<semaphore_mem>>) attributes {dimension_semantics = [], scalar_prefetch = 0 : i64, scratch_operands = 2 : i64, tpu.core_type = #tpu.core_type<tc>} {
    %cst = arith.constant 1.250000e-01 : f32
    %0 = vector.broadcast %cst : f32 to vector<8x8xf32>
    %c0_i32 = arith.constant 0 : i32
    %c0_i32_0 = arith.constant 0 : i32
    %c0_i32_1 = arith.constant 0 : i32
    %c0_i32_2 = arith.constant 0 : i32
    %c0_i32_3 = arith.constant 0 : i32
    %1 = tpu.memref_slice %arg1[%c0_i32, %c0_i32_2, %c0_i32_3] : memref<5x128x128xf32, #tpu.memory_space<any>> -> memref<1x128x128xf32, #tpu.memory_space<any>>
    %2 = tpu.memref_squeeze %1 : memref<1x128x128xf32, #tpu.memory_space<any>> -> memref<128x128xf32, #tpu.memory_space<any>>
    %c0_i32_4 = arith.constant 0 : i32
    %c0_i32_5 = arith.constant 0 : i32
    %3 = tpu.memref_slice %arg4[%c0_i32_0, %c0_i32_4, %c0_i32_5] : memref<2x128x128xf32, #tpu.memory_space<vmem>> -> memref<1x128x128xf32, #tpu.memory_space<vmem>>
    %4 = tpu.memref_squeeze %3 : memref<1x128x128xf32, #tpu.memory_space<vmem>> -> memref<128x128xf32, #tpu.memory_space<vmem>>
    %5 = tpu.memref_slice %arg5[%c0_i32_1] : memref<2x!tpu.dma_semaphore, #tpu.memory_space<semaphore_mem>> -> memref<1x!tpu.dma_semaphore, #tpu.memory_space<semaphore_mem>>
    %6 = tpu.memref_squeeze %5 : memref<1x!tpu.dma_semaphore, #tpu.memory_space<semaphore_mem>> -> memref<!tpu.dma_semaphore, #tpu.memory_space<semaphore_mem>>
    tpu.enqueue_dma source(%2 : memref<128x128xf32, #tpu.memory_space<any>>) target(%4 : memref<128x128xf32, #tpu.memory_space<vmem>>) target_semaphore(%6 : memref<!tpu.dma_semaphore, #tpu.memory_space<semaphore_mem>>)
    %c0 = arith.constant 0 : index
    %c0_6 = arith.constant 0 : index
    %7 = vector.load %arg0[%c0, %c0_6] : memref<8x128xf32, #tpu.memory_space<vmem>>, vector<8x128xf32>
    %c0_i32_7 = arith.constant 0 : i32
    %c0_i32_8 = arith.constant 0 : i32
    %c0_i32_9 = arith.constant 0 : i32
    %c0_i32_10 = arith.constant 0 : i32
    %c0_i32_11 = arith.constant 0 : i32
    %8 = tpu.memref_slice %arg1[%c0_i32_7, %c0_i32_10, %c0_i32_11] : memref<5x128x128xf32, #tpu.memory_space<any>> -> memref<1x128x128xf32, #tpu.memory_space<any>>
    %9 = tpu.memref_squeeze %8 : memref<1x128x128xf32, #tpu.memory_space<any>> -> memref<128x128xf32, #tpu.memory_space<any>>
    %c0_i32_12 = arith.constant 0 : i32
    %c0_i32_13 = arith.constant 0 : i32
    %10 = tpu.memref_slice %arg4[%c0_i32_8, %c0_i32_12, %c0_i32_13] : memref<2x128x128xf32, #tpu.memory_space<vmem>> -> memref<1x128x128xf32, #tpu.memory_space<vmem>>
    %11 = tpu.memref_squeeze %10 : memref<1x128x128xf32, #tpu.memory_space<vmem>> -> memref<128x128xf32, #tpu.memory_space<vmem>>
    %12 = tpu.memref_slice %arg5[%c0_i32_9] : memref<2x!tpu.dma_semaphore, #tpu.memory_space<semaphore_mem>> -> memref<1x!tpu.dma_semaphore, #tpu.memory_space<semaphore_mem>>
    %13 = tpu.memref_squeeze %12 : memref<1x!tpu.dma_semaphore, #tpu.memory_space<semaphore_mem>> -> memref<!tpu.dma_semaphore, #tpu.memory_space<semaphore_mem>>
    tpu.wait_dma2 semaphore(%13 : memref<!tpu.dma_semaphore, #tpu.memory_space<semaphore_mem>>) src(%9 : memref<128x128xf32, #tpu.memory_space<any>>) dst(%11 : memref<128x128xf32, #tpu.memory_space<vmem>>)
    %c1_i32 = arith.constant 1 : i32
    %c1_i32_14 = arith.constant 1 : i32
    %c1_i32_15 = arith.constant 1 : i32
    %c0_i32_16 = arith.constant 0 : i32
    %c0_i32_17 = arith.constant 0 : i32
    %14 = tpu.memref_slice %arg1[%c1_i32, %c0_i32_16, %c0_i32_17] : memref<5x128x128xf32, #tpu.memory_space<any>> -> memref<1x128x128xf32, #tpu.memory_space<any>>
    %15 = tpu.memref_squeeze %14 : memref<1x128x128xf32, #tpu.memory_space<any>> -> memref<128x128xf32, #tpu.memory_space<any>>
    %c0_i32_18 = arith.constant 0 : i32
    %c0_i32_19 = arith.constant 0 : i32
    %16 = tpu.memref_slice %arg4[%c1_i32_14, %c0_i32_18, %c0_i32_19] : memref<2x128x128xf32, #tpu.memory_space<vmem>> -> memref<1x128x128xf32, #tpu.memory_space<vmem>>
    %17 = tpu.memref_squeeze %16 : memref<1x128x128xf32, #tpu.memory_space<vmem>> -> memref<128x128xf32, #tpu.memory_space<vmem>>
    %18 = tpu.memref_slice %arg5[%c1_i32_15] : memref<2x!tpu.dma_semaphore, #tpu.memory_space<semaphore_mem>> -> memref<1x!tpu.dma_semaphore, #tpu.memory_space<semaphore_mem>>
    %19 = tpu.memref_squeeze %18 : memref<1x!tpu.dma_semaphore, #tpu.memory_space<semaphore_mem>> -> memref<!tpu.dma_semaphore, #tpu.memory_space<semaphore_mem>>
    tpu.enqueue_dma source(%15 : memref<128x128xf32, #tpu.memory_space<any>>) target(%17 : memref<128x128xf32, #tpu.memory_space<vmem>>) target_semaphore(%19 : memref<!tpu.dma_semaphore, #tpu.memory_space<semaphore_mem>>)
    %c0_20 = arith.constant 0 : index
    %c0_21 = arith.constant 0 : index
    %c0_22 = arith.constant 0 : index
    %20 = vector.load %arg4[%c0_20, %c0_21, %c0_22] : memref<2x128x128xf32, #tpu.memory_space<vmem>>, vector<1x128x128xf32>
    %21 = vector.shape_cast %20 : vector<1x128x128xf32> to vector<128x128xf32>
    %cst_23 = arith.constant dense<0.000000e+00> : vector<8x128xf32>
    %22 = tpu.matmul %7, %21, %cst_23 {dimension_numbers = #tpu.dot_dimension_numbers<[1], [0], [0], [1], [0, 0, 1, 1], [], []>} : vector<8x128xf32>, vector<128x128xf32>, vector<8x128xf32> -> vector<8x128xf32>
    %23 = arith.mulf %22, %22 : vector<8x128xf32>
    %24 = tpu.concatenate %22, %23 in 1 : vector<8x128xf32>, vector<8x128xf32> -> vector<8x256xf32>
    %cst_24 = arith.constant dense<0.000000e+00> : vector<8x256xf32>
    %25 = tpu.matmul %0, %24, %cst_24 {dimension_numbers = #tpu.dot_dimension_numbers<[1], [0], [0], [1], [0, 0, 1, 1], [], []>} : vector<8x8xf32>, vector<8x256xf32>, vector<8x256xf32> -> vector<8x256xf32>
    %26 = vector.extract_strided_slice %25 {offsets = [0, 0], sizes = [1, 128], strides = [1, 1]} : vector<8x256xf32> to vector<1x128xf32>
    %27 = vector.extract_strided_slice %25 {offsets = [0, 128], sizes = [1, 128], strides = [1, 1]} : vector<8x256xf32> to vector<1x128xf32>
    %28 = arith.mulf %26, %26 : vector<1x128xf32>
    %29 = arith.subf %27, %28 : vector<1x128xf32>
    %cst_25 = arith.constant 0.000000e+00 : f32
    %30 = vector.broadcast %cst_25 : f32 to vector<1x128xf32>
    %31 = arith.maximumf %29, %30 : vector<1x128xf32>
    %cst_26 = arith.constant 9.99999974E-6 : f32
    %32 = vector.broadcast %cst_26 : f32 to vector<1x128xf32>
    %33 = arith.addf %31, %32 : vector<1x128xf32>
    %34 = math.rsqrt %33 : vector<1x128xf32>
    %35 = vector.broadcast %26 : vector<1x128xf32> to vector<8x128xf32>
    %36 = arith.subf %22, %35 : vector<8x128xf32>
    %37 = vector.broadcast %34 : vector<1x128xf32> to vector<8x128xf32>
    %38 = arith.mulf %36, %37 : vector<8x128xf32>
    %cst_27 = arith.constant 0.000000e+00 : f32
    %39 = vector.broadcast %cst_27 : f32 to vector<8x128xf32>
    %40 = arith.maximumf %38, %39 : vector<8x128xf32>
    %c1_i32_28 = arith.constant 1 : i32
    %c1_i32_29 = arith.constant 1 : i32
    %c1_i32_30 = arith.constant 1 : i32
    %c0_i32_31 = arith.constant 0 : i32
    %c0_i32_32 = arith.constant 0 : i32
    %41 = tpu.memref_slice %arg1[%c1_i32_28, %c0_i32_31, %c0_i32_32] : memref<5x128x128xf32, #tpu.memory_space<any>> -> memref<1x128x128xf32, #tpu.memory_space<any>>
    %42 = tpu.memref_squeeze %41 : memref<1x128x128xf32, #tpu.memory_space<any>> -> memref<128x128xf32, #tpu.memory_space<any>>
    %c0_i32_33 = arith.constant 0 : i32
    %c0_i32_34 = arith.constant 0 : i32
    %43 = tpu.memref_slice %arg4[%c1_i32_29, %c0_i32_33, %c0_i32_34] : memref<2x128x128xf32, #tpu.memory_space<vmem>> -> memref<1x128x128xf32, #tpu.memory_space<vmem>>
    %44 = tpu.memref_squeeze %43 : memref<1x128x128xf32, #tpu.memory_space<vmem>> -> memref<128x128xf32, #tpu.memory_space<vmem>>
    %45 = tpu.memref_slice %arg5[%c1_i32_30] : memref<2x!tpu.dma_semaphore, #tpu.memory_space<semaphore_mem>> -> memref<1x!tpu.dma_semaphore, #tpu.memory_space<semaphore_mem>>
    %46 = tpu.memref_squeeze %45 : memref<1x!tpu.dma_semaphore, #tpu.memory_space<semaphore_mem>> -> memref<!tpu.dma_semaphore, #tpu.memory_space<semaphore_mem>>
    tpu.wait_dma2 semaphore(%46 : memref<!tpu.dma_semaphore, #tpu.memory_space<semaphore_mem>>) src(%42 : memref<128x128xf32, #tpu.memory_space<any>>) dst(%44 : memref<128x128xf32, #tpu.memory_space<vmem>>)
    %c2_i32 = arith.constant 2 : i32
    %c0_i32_35 = arith.constant 0 : i32
    %c0_i32_36 = arith.constant 0 : i32
    %c0_i32_37 = arith.constant 0 : i32
    %c0_i32_38 = arith.constant 0 : i32
    %47 = tpu.memref_slice %arg1[%c2_i32, %c0_i32_37, %c0_i32_38] : memref<5x128x128xf32, #tpu.memory_space<any>> -> memref<1x128x128xf32, #tpu.memory_space<any>>
    %48 = tpu.memref_squeeze %47 : memref<1x128x128xf32, #tpu.memory_space<any>> -> memref<128x128xf32, #tpu.memory_space<any>>
    %c0_i32_39 = arith.constant 0 : i32
    %c0_i32_40 = arith.constant 0 : i32
    %49 = tpu.memref_slice %arg4[%c0_i32_35, %c0_i32_39, %c0_i32_40] : memref<2x128x128xf32, #tpu.memory_space<vmem>> -> memref<1x128x128xf32, #tpu.memory_space<vmem>>
    %50 = tpu.memref_squeeze %49 : memref<1x128x128xf32, #tpu.memory_space<vmem>> -> memref<128x128xf32, #tpu.memory_space<vmem>>
    %51 = tpu.memref_slice %arg5[%c0_i32_36] : memref<2x!tpu.dma_semaphore, #tpu.memory_space<semaphore_mem>> -> memref<1x!tpu.dma_semaphore, #tpu.memory_space<semaphore_mem>>
    %52 = tpu.memref_squeeze %51 : memref<1x!tpu.dma_semaphore, #tpu.memory_space<semaphore_mem>> -> memref<!tpu.dma_semaphore, #tpu.memory_space<semaphore_mem>>
    tpu.enqueue_dma source(%48 : memref<128x128xf32, #tpu.memory_space<any>>) target(%50 : memref<128x128xf32, #tpu.memory_space<vmem>>) target_semaphore(%52 : memref<!tpu.dma_semaphore, #tpu.memory_space<semaphore_mem>>)
    %c1 = arith.constant 1 : index
    %c0_41 = arith.constant 0 : index
    %c0_42 = arith.constant 0 : index
    %53 = vector.load %arg4[%c1, %c0_41, %c0_42] : memref<2x128x128xf32, #tpu.memory_space<vmem>>, vector<1x128x128xf32>
    %54 = vector.shape_cast %53 : vector<1x128x128xf32> to vector<128x128xf32>
    %cst_43 = arith.constant dense<0.000000e+00> : vector<8x128xf32>
    %55 = tpu.matmul %40, %54, %cst_43 {dimension_numbers = #tpu.dot_dimension_numbers<[1], [0], [0], [1], [0, 0, 1, 1], [], []>} : vector<8x128xf32>, vector<128x128xf32>, vector<8x128xf32> -> vector<8x128xf32>
    %56 = arith.mulf %55, %55 : vector<8x128xf32>
    %57 = tpu.concatenate %55, %56 in 1 : vector<8x128xf32>, vector<8x128xf32> -> vector<8x256xf32>
    %cst_44 = arith.constant dense<0.000000e+00> : vector<8x256xf32>
    %58 = tpu.matmul %0, %57, %cst_44 {dimension_numbers = #tpu.dot_dimension_numbers<[1], [0], [0], [1], [0, 0, 1, 1], [], []>} : vector<8x8xf32>, vector<8x256xf32>, vector<8x256xf32> -> vector<8x256xf32>
    %59 = vector.extract_strided_slice %58 {offsets = [0, 0], sizes = [1, 128], strides = [1, 1]} : vector<8x256xf32> to vector<1x128xf32>
    %60 = vector.extract_strided_slice %58 {offsets = [0, 128], sizes = [1, 128], strides = [1, 1]} : vector<8x256xf32> to vector<1x128xf32>
    %61 = arith.mulf %59, %59 : vector<1x128xf32>
    %62 = arith.subf %60, %61 : vector<1x128xf32>
    %cst_45 = arith.constant 0.000000e+00 : f32
    %63 = vector.broadcast %cst_45 : f32 to vector<1x128xf32>
    %64 = arith.maximumf %62, %63 : vector<1x128xf32>
    %cst_46 = arith.constant 9.99999974E-6 : f32
    %65 = vector.broadcast %cst_46 : f32 to vector<1x128xf32>
    %66 = arith.addf %64, %65 : vector<1x128xf32>
    %67 = math.rsqrt %66 : vector<1x128xf32>
    %68 = vector.broadcast %59 : vector<1x128xf32> to vector<8x128xf32>
    %69 = arith.subf %55, %68 : vector<8x128xf32>
    %70 = vector.broadcast %67 : vector<1x128xf32> to vector<8x128xf32>
    %71 = arith.mulf %69, %70 : vector<8x128xf32>
    %cst_47 = arith.constant 0.000000e+00 : f32
    %72 = vector.broadcast %cst_47 : f32 to vector<8x128xf32>
    %73 = arith.maximumf %71, %72 : vector<8x128xf32>
    %c2_i32_48 = arith.constant 2 : i32
    %c0_i32_49 = arith.constant 0 : i32
    %c0_i32_50 = arith.constant 0 : i32
    %c0_i32_51 = arith.constant 0 : i32
    %c0_i32_52 = arith.constant 0 : i32
    %74 = tpu.memref_slice %arg1[%c2_i32_48, %c0_i32_51, %c0_i32_52] : memref<5x128x128xf32, #tpu.memory_space<any>> -> memref<1x128x128xf32, #tpu.memory_space<any>>
    %75 = tpu.memref_squeeze %74 : memref<1x128x128xf32, #tpu.memory_space<any>> -> memref<128x128xf32, #tpu.memory_space<any>>
    %c0_i32_53 = arith.constant 0 : i32
    %c0_i32_54 = arith.constant 0 : i32
    %76 = tpu.memref_slice %arg4[%c0_i32_49, %c0_i32_53, %c0_i32_54] : memref<2x128x128xf32, #tpu.memory_space<vmem>> -> memref<1x128x128xf32, #tpu.memory_space<vmem>>
    %77 = tpu.memref_squeeze %76 : memref<1x128x128xf32, #tpu.memory_space<vmem>> -> memref<128x128xf32, #tpu.memory_space<vmem>>
    %78 = tpu.memref_slice %arg5[%c0_i32_50] : memref<2x!tpu.dma_semaphore, #tpu.memory_space<semaphore_mem>> -> memref<1x!tpu.dma_semaphore, #tpu.memory_space<semaphore_mem>>
    %79 = tpu.memref_squeeze %78 : memref<1x!tpu.dma_semaphore, #tpu.memory_space<semaphore_mem>> -> memref<!tpu.dma_semaphore, #tpu.memory_space<semaphore_mem>>
    tpu.wait_dma2 semaphore(%79 : memref<!tpu.dma_semaphore, #tpu.memory_space<semaphore_mem>>) src(%75 : memref<128x128xf32, #tpu.memory_space<any>>) dst(%77 : memref<128x128xf32, #tpu.memory_space<vmem>>)
    %c3_i32 = arith.constant 3 : i32
    %c1_i32_55 = arith.constant 1 : i32
    %c1_i32_56 = arith.constant 1 : i32
    %c0_i32_57 = arith.constant 0 : i32
    %c0_i32_58 = arith.constant 0 : i32
    %80 = tpu.memref_slice %arg1[%c3_i32, %c0_i32_57, %c0_i32_58] : memref<5x128x128xf32, #tpu.memory_space<any>> -> memref<1x128x128xf32, #tpu.memory_space<any>>
    %81 = tpu.memref_squeeze %80 : memref<1x128x128xf32, #tpu.memory_space<any>> -> memref<128x128xf32, #tpu.memory_space<any>>
    %c0_i32_59 = arith.constant 0 : i32
    %c0_i32_60 = arith.constant 0 : i32
    %82 = tpu.memref_slice %arg4[%c1_i32_55, %c0_i32_59, %c0_i32_60] : memref<2x128x128xf32, #tpu.memory_space<vmem>> -> memref<1x128x128xf32, #tpu.memory_space<vmem>>
    %83 = tpu.memref_squeeze %82 : memref<1x128x128xf32, #tpu.memory_space<vmem>> -> memref<128x128xf32, #tpu.memory_space<vmem>>
    %84 = tpu.memref_slice %arg5[%c1_i32_56] : memref<2x!tpu.dma_semaphore, #tpu.memory_space<semaphore_mem>> -> memref<1x!tpu.dma_semaphore, #tpu.memory_space<semaphore_mem>>
    %85 = tpu.memref_squeeze %84 : memref<1x!tpu.dma_semaphore, #tpu.memory_space<semaphore_mem>> -> memref<!tpu.dma_semaphore, #tpu.memory_space<semaphore_mem>>
    tpu.enqueue_dma source(%81 : memref<128x128xf32, #tpu.memory_space<any>>) target(%83 : memref<128x128xf32, #tpu.memory_space<vmem>>) target_semaphore(%85 : memref<!tpu.dma_semaphore, #tpu.memory_space<semaphore_mem>>)
    %c0_61 = arith.constant 0 : index
    %c0_62 = arith.constant 0 : index
    %c0_63 = arith.constant 0 : index
    %86 = vector.load %arg4[%c0_61, %c0_62, %c0_63] : memref<2x128x128xf32, #tpu.memory_space<vmem>>, vector<1x128x128xf32>
    %87 = vector.shape_cast %86 : vector<1x128x128xf32> to vector<128x128xf32>
    %cst_64 = arith.constant dense<0.000000e+00> : vector<8x128xf32>
    %88 = tpu.matmul %73, %87, %cst_64 {dimension_numbers = #tpu.dot_dimension_numbers<[1], [0], [0], [1], [0, 0, 1, 1], [], []>} : vector<8x128xf32>, vector<128x128xf32>, vector<8x128xf32> -> vector<8x128xf32>
    %89 = arith.mulf %88, %88 : vector<8x128xf32>
    %90 = tpu.concatenate %88, %89 in 1 : vector<8x128xf32>, vector<8x128xf32> -> vector<8x256xf32>
    %cst_65 = arith.constant dense<0.000000e+00> : vector<8x256xf32>
    %91 = tpu.matmul %0, %90, %cst_65 {dimension_numbers = #tpu.dot_dimension_numbers<[1], [0], [0], [1], [0, 0, 1, 1], [], []>} : vector<8x8xf32>, vector<8x256xf32>, vector<8x256xf32> -> vector<8x256xf32>
    %92 = vector.extract_strided_slice %91 {offsets = [0, 0], sizes = [1, 128], strides = [1, 1]} : vector<8x256xf32> to vector<1x128xf32>
    %93 = vector.extract_strided_slice %91 {offsets = [0, 128], sizes = [1, 128], strides = [1, 1]} : vector<8x256xf32> to vector<1x128xf32>
    %94 = arith.mulf %92, %92 : vector<1x128xf32>
    %95 = arith.subf %93, %94 : vector<1x128xf32>
    %cst_66 = arith.constant 0.000000e+00 : f32
    %96 = vector.broadcast %cst_66 : f32 to vector<1x128xf32>
    %97 = arith.maximumf %95, %96 : vector<1x128xf32>
    %cst_67 = arith.constant 9.99999974E-6 : f32
    %98 = vector.broadcast %cst_67 : f32 to vector<1x128xf32>
    %99 = arith.addf %97, %98 : vector<1x128xf32>
    %100 = math.rsqrt %99 : vector<1x128xf32>
    %101 = vector.broadcast %92 : vector<1x128xf32> to vector<8x128xf32>
    %102 = arith.subf %88, %101 : vector<8x128xf32>
    %103 = vector.broadcast %100 : vector<1x128xf32> to vector<8x128xf32>
    %104 = arith.mulf %102, %103 : vector<8x128xf32>
    %cst_68 = arith.constant 0.000000e+00 : f32
    %105 = vector.broadcast %cst_68 : f32 to vector<8x128xf32>
    %106 = arith.maximumf %104, %105 : vector<8x128xf32>
    %c3_i32_69 = arith.constant 3 : i32
    %c1_i32_70 = arith.constant 1 : i32
    %c1_i32_71 = arith.constant 1 : i32
    %c0_i32_72 = arith.constant 0 : i32
    %c0_i32_73 = arith.constant 0 : i32
    %107 = tpu.memref_slice %arg1[%c3_i32_69, %c0_i32_72, %c0_i32_73] : memref<5x128x128xf32, #tpu.memory_space<any>> -> memref<1x128x128xf32, #tpu.memory_space<any>>
    %108 = tpu.memref_squeeze %107 : memref<1x128x128xf32, #tpu.memory_space<any>> -> memref<128x128xf32, #tpu.memory_space<any>>
    %c0_i32_74 = arith.constant 0 : i32
    %c0_i32_75 = arith.constant 0 : i32
    %109 = tpu.memref_slice %arg4[%c1_i32_70, %c0_i32_74, %c0_i32_75] : memref<2x128x128xf32, #tpu.memory_space<vmem>> -> memref<1x128x128xf32, #tpu.memory_space<vmem>>
    %110 = tpu.memref_squeeze %109 : memref<1x128x128xf32, #tpu.memory_space<vmem>> -> memref<128x128xf32, #tpu.memory_space<vmem>>
    %111 = tpu.memref_slice %arg5[%c1_i32_71] : memref<2x!tpu.dma_semaphore, #tpu.memory_space<semaphore_mem>> -> memref<1x!tpu.dma_semaphore, #tpu.memory_space<semaphore_mem>>
    %112 = tpu.memref_squeeze %111 : memref<1x!tpu.dma_semaphore, #tpu.memory_space<semaphore_mem>> -> memref<!tpu.dma_semaphore, #tpu.memory_space<semaphore_mem>>
    tpu.wait_dma2 semaphore(%112 : memref<!tpu.dma_semaphore, #tpu.memory_space<semaphore_mem>>) src(%108 : memref<128x128xf32, #tpu.memory_space<any>>) dst(%110 : memref<128x128xf32, #tpu.memory_space<vmem>>)
    %c4_i32 = arith.constant 4 : i32
    %c0_i32_76 = arith.constant 0 : i32
    %c0_i32_77 = arith.constant 0 : i32
    %c0_i32_78 = arith.constant 0 : i32
    %c0_i32_79 = arith.constant 0 : i32
    %113 = tpu.memref_slice %arg1[%c4_i32, %c0_i32_78, %c0_i32_79] : memref<5x128x128xf32, #tpu.memory_space<any>> -> memref<1x128x128xf32, #tpu.memory_space<any>>
    %114 = tpu.memref_squeeze %113 : memref<1x128x128xf32, #tpu.memory_space<any>> -> memref<128x128xf32, #tpu.memory_space<any>>
    %c0_i32_80 = arith.constant 0 : i32
    %c0_i32_81 = arith.constant 0 : i32
    %115 = tpu.memref_slice %arg4[%c0_i32_76, %c0_i32_80, %c0_i32_81] : memref<2x128x128xf32, #tpu.memory_space<vmem>> -> memref<1x128x128xf32, #tpu.memory_space<vmem>>
    %116 = tpu.memref_squeeze %115 : memref<1x128x128xf32, #tpu.memory_space<vmem>> -> memref<128x128xf32, #tpu.memory_space<vmem>>
    %117 = tpu.memref_slice %arg5[%c0_i32_77] : memref<2x!tpu.dma_semaphore, #tpu.memory_space<semaphore_mem>> -> memref<1x!tpu.dma_semaphore, #tpu.memory_space<semaphore_mem>>
    %118 = tpu.memref_squeeze %117 : memref<1x!tpu.dma_semaphore, #tpu.memory_space<semaphore_mem>> -> memref<!tpu.dma_semaphore, #tpu.memory_space<semaphore_mem>>
    tpu.enqueue_dma source(%114 : memref<128x128xf32, #tpu.memory_space<any>>) target(%116 : memref<128x128xf32, #tpu.memory_space<vmem>>) target_semaphore(%118 : memref<!tpu.dma_semaphore, #tpu.memory_space<semaphore_mem>>)
    %c1_82 = arith.constant 1 : index
    %c0_83 = arith.constant 0 : index
    %c0_84 = arith.constant 0 : index
    %119 = vector.load %arg4[%c1_82, %c0_83, %c0_84] : memref<2x128x128xf32, #tpu.memory_space<vmem>>, vector<1x128x128xf32>
    %120 = vector.shape_cast %119 : vector<1x128x128xf32> to vector<128x128xf32>
    %cst_85 = arith.constant dense<0.000000e+00> : vector<8x128xf32>
    %121 = tpu.matmul %106, %120, %cst_85 {dimension_numbers = #tpu.dot_dimension_numbers<[1], [0], [0], [1], [0, 0, 1, 1], [], []>} : vector<8x128xf32>, vector<128x128xf32>, vector<8x128xf32> -> vector<8x128xf32>
    %122 = arith.mulf %121, %121 : vector<8x128xf32>
    %123 = tpu.concatenate %121, %122 in 1 : vector<8x128xf32>, vector<8x128xf32> -> vector<8x256xf32>
    %cst_86 = arith.constant dense<0.000000e+00> : vector<8x256xf32>
    %124 = tpu.matmul %0, %123, %cst_86 {dimension_numbers = #tpu.dot_dimension_numbers<[1], [0], [0], [1], [0, 0, 1, 1], [], []>} : vector<8x8xf32>, vector<8x256xf32>, vector<8x256xf32> -> vector<8x256xf32>
    %125 = vector.extract_strided_slice %124 {offsets = [0, 0], sizes = [1, 128], strides = [1, 1]} : vector<8x256xf32> to vector<1x128xf32>
    %126 = vector.extract_strided_slice %124 {offsets = [0, 128], sizes = [1, 128], strides = [1, 1]} : vector<8x256xf32> to vector<1x128xf32>
    %127 = arith.mulf %125, %125 : vector<1x128xf32>
    %128 = arith.subf %126, %127 : vector<1x128xf32>
    %cst_87 = arith.constant 0.000000e+00 : f32
    %129 = vector.broadcast %cst_87 : f32 to vector<1x128xf32>
    %130 = arith.maximumf %128, %129 : vector<1x128xf32>
    %cst_88 = arith.constant 9.99999974E-6 : f32
    %131 = vector.broadcast %cst_88 : f32 to vector<1x128xf32>
    %132 = arith.addf %130, %131 : vector<1x128xf32>
    %133 = math.rsqrt %132 : vector<1x128xf32>
    %134 = vector.broadcast %125 : vector<1x128xf32> to vector<8x128xf32>
    %135 = arith.subf %121, %134 : vector<8x128xf32>
    %136 = vector.broadcast %133 : vector<1x128xf32> to vector<8x128xf32>
    %137 = arith.mulf %135, %136 : vector<8x128xf32>
    %cst_89 = arith.constant 0.000000e+00 : f32
    %138 = vector.broadcast %cst_89 : f32 to vector<8x128xf32>
    %139 = arith.maximumf %137, %138 : vector<8x128xf32>
    %c4_i32_90 = arith.constant 4 : i32
    %c0_i32_91 = arith.constant 0 : i32
    %c0_i32_92 = arith.constant 0 : i32
    %c0_i32_93 = arith.constant 0 : i32
    %c0_i32_94 = arith.constant 0 : i32
    %140 = tpu.memref_slice %arg1[%c4_i32_90, %c0_i32_93, %c0_i32_94] : memref<5x128x128xf32, #tpu.memory_space<any>> -> memref<1x128x128xf32, #tpu.memory_space<any>>
    %141 = tpu.memref_squeeze %140 : memref<1x128x128xf32, #tpu.memory_space<any>> -> memref<128x128xf32, #tpu.memory_space<any>>
    %c0_i32_95 = arith.constant 0 : i32
    %c0_i32_96 = arith.constant 0 : i32
    %142 = tpu.memref_slice %arg4[%c0_i32_91, %c0_i32_95, %c0_i32_96] : memref<2x128x128xf32, #tpu.memory_space<vmem>> -> memref<1x128x128xf32, #tpu.memory_space<vmem>>
    %143 = tpu.memref_squeeze %142 : memref<1x128x128xf32, #tpu.memory_space<vmem>> -> memref<128x128xf32, #tpu.memory_space<vmem>>
    %144 = tpu.memref_slice %arg5[%c0_i32_92] : memref<2x!tpu.dma_semaphore, #tpu.memory_space<semaphore_mem>> -> memref<1x!tpu.dma_semaphore, #tpu.memory_space<semaphore_mem>>
    %145 = tpu.memref_squeeze %144 : memref<1x!tpu.dma_semaphore, #tpu.memory_space<semaphore_mem>> -> memref<!tpu.dma_semaphore, #tpu.memory_space<semaphore_mem>>
    tpu.wait_dma2 semaphore(%145 : memref<!tpu.dma_semaphore, #tpu.memory_space<semaphore_mem>>) src(%141 : memref<128x128xf32, #tpu.memory_space<any>>) dst(%143 : memref<128x128xf32, #tpu.memory_space<vmem>>)
    %c0_97 = arith.constant 0 : index
    %c0_98 = arith.constant 0 : index
    %c0_99 = arith.constant 0 : index
    %146 = vector.load %arg4[%c0_97, %c0_98, %c0_99] : memref<2x128x128xf32, #tpu.memory_space<vmem>>, vector<1x128x128xf32>
    %147 = vector.shape_cast %146 : vector<1x128x128xf32> to vector<128x128xf32>
    %cst_100 = arith.constant dense<0.000000e+00> : vector<8x128xf32>
    %148 = tpu.matmul %139, %147, %cst_100 {dimension_numbers = #tpu.dot_dimension_numbers<[1], [0], [0], [1], [0, 0, 1, 1], [], []>} : vector<8x128xf32>, vector<128x128xf32>, vector<8x128xf32> -> vector<8x128xf32>
    %c0_101 = arith.constant 0 : index
    %c0_102 = arith.constant 0 : index
    %149 = vector.load %arg2[%c0_101, %c0_102] : memref<1x128xf32, #tpu.memory_space<vmem>>, vector<1x128xf32>
    %150 = vector.broadcast %149 : vector<1x128xf32> to vector<8x128xf32>
    %151 = arith.addf %148, %150 : vector<8x128xf32>
    %c0_103 = arith.constant 0 : index
    %c0_104 = arith.constant 0 : index
    %152 = vector.load %arg3[%c0_103, %c0_104] : memref<8x128xf32, #tpu.memory_space<vmem>>, vector<8x128xf32>
    tpu.vector_store %arg3[%c0_103, %c0_104], %151 {strides = array<i32>} : memref<8x128xf32, #tpu.memory_space<vmem>>, vector<8x128xf32>,
    return
  }
}

</mosaic_0001>

<bundles_post_ra>
// kernel: tpu_custom_call.1
= control target key start
LH: loop header
LB: loop body
LE: loop exit
PB: predicated region body
PF: predicated region fallthrough
CT: control target
= control target key end

     0   :  { %8 = vsyncpa [#allocation5], 0  ;;  %s1779_s0 = inlined_call_operand.hbm [shape: f32[8,128], index: 0, kind: input, shape index: {}]   ;;  %s1780_s1 = inlined_call_operand.hbm [shape: f32[5,128,128], index: 1, kind: input, shape index: {}]   ;;  %s1781_s2 = inlined_call_operand.vmem [shape: f32[1,128], index: 2, kind: input, shape index: {}]   ;;  %s1782_s3 = inlined_call_operand.hbm [shape: f32[8,128], index: 3, kind: output, shape index: {}]  }
   0x1   :  { %9 = vsyncpa [#allocation6], 0  ;;  %s1503_s12 = smov [#allocation4]   ;;  %s1323_s16 = scalar_lea.hbm %s1779_s0, 128 }
   0x2   :  { %s16_s13 = sshll.u32 %s1503_s12, 4  ;;  %p1324_p0 = scmp.ne.s32.totalorder %s1779_s0, %s1323_s16  ;;  %s17_s13 = int_to_ptr.vmem [resolvable:$true] %s16_s13 }
   0x3   :  { %p1327_p1 = scmp.lt.u32.totalorder %s1323_s16, %s1779_s0 }
   0x5   :  { %p1329_p2 = pnand %p1327_p1, %p1324_p0 }
   0x7   :  { %1332 = shalt.err (!%p1329_p2)
}
   0x8   :  { %s1333_s21 = scalar_lea.vmem %s17_s13, 128  ;;  %p1338_p4 = scmp.lt.s32.totalorder %s17_s13, %s17_s13 }
   0x9   :  { %p1334_p3 = scmp.ne.s32.totalorder %s17_s13, %s1333_s21  ;;  %p1339_p5 = scmp.lt.s32.totalorder %s1333_s21, %s1333_s21 }
   0xb   :  { %p1340_p6 = por %p1339_p5, %p1338_p4 }
   0xd   :  { %p1341_p7 = pnand %p1340_p6, %p1334_p3 }
   0xf   :  { %1344 = shalt.err (!%p1341_p7)
}
  0x10   :  { %19 = dma.hbm_to_vmem [thread:$0]  %s1779_s0, 128, %s17_s13, [#allocation5]  }
  0x11   :  { %1489 = dma.done.wait [#allocation5], 128  }
  0x12   :  { %1490 = vsyncadd [#allocation5], 4294967168  ;;  %s1504_s24 = smov [#allocation2]   ;;  %s1548_s28 = scalar_lea.hbm %s1780_s1, 2048 }
  0x13   :  { %s32_s25 = sshll.u32 %s1504_s24, 4  ;;  %p1346_p8 = scmp.ne.s32.totalorder %s1780_s1, %s1548_s28  ;;  %s1543_s25 = int_to_ptr.vmem [resolvable:$true] %s32_s25 }
  0x14   :  { %s1557_s5 = scalar_lea.hbm %s1780_s1, 10240  ;;  %p1349_p10 = scmp.lt.u32.totalorder %s1548_s28, %s1780_s1 }
  0x15   :  { %p1348_p9 = scmp.lt.u32.totalorder %s1557_s5, %s1548_s28 }
  0x17   :  { %p1350_p11 = por %p1349_p10, %p1348_p9 }
  0x19   :  { %p1351_p12 = pnand %p1350_p11, %p1346_p8 }
  0x1b   :  { %1354 = shalt.err (!%p1351_p12)  }
  0x1c   :  { %s1355_s10 = scalar_lea.vmem %s1543_s25, 2048  ;;  %s1359_s11 = scalar_lea.vmem %s1543_s25, 4096 }
  0x1d   :  { %p1356_p13 = scmp.ne.s32.totalorder %s1543_s25, %s1355_s10  ;;  %p1360_p0 = scmp.lt.s32.totalorder %s1543_s25, %s1543_s25 }
  0x1e   :  { %p1361_p1 = scmp.lt.s32.totalorder %s1359_s11, %s1355_s10 }
  0x20   :  { %p1362_p2 = por %p1361_p1, %p1360_p0 }
  0x22   :  { %p1577_p3 = pnand %p1362_p2, %p1356_p13 }
  0x24   :  { %1366 = shalt.err (!%p1577_p3)  }
  0x25   :  { %35 = dma.hbm_to_vmem [thread:$0]  %s1780_s1, 2048, %s1543_s25, [#allocation3]  ;;  %v1587_v0 = vld [vmem:[#allocation4] sm:$0xff] }
  0x26   :  { %1491 = dma.done.wait [#allocation3], 2048 }
  0x27   :  { %1492 = vsyncadd [#allocation3], 4294965248  ;;  %s1505_s15 = smov [#allocation2 + $0x80]   ;;  %v1506_v1 = vmov 0.0|0.0   ;;  %vm1507_vm0 = vmmov 0   ;;  %v1508_v2 = vmov 0.0  }
  0x28   :  { %s50_s16 = sshll.u32 %s1505_s15, 4  ;;  %1187 = vmatprep.subr.bf16.mxu0 %v1506_v1  ;;  %1044 = vmatprep.mubr.msk.f32.mxu0 %vm1507_vm0, %v1508_v2  ;;  %s1597_s19 = scalar_lea.hbm %s1780_s1, 4096  ;;  %s1590_s16 = int_to_ptr.vmem [resolvable:$true] %s50_s16 }
  0x29   :  { %p1368_p4 = scmp.ne.s32.totalorder %s1548_s28, %s1597_s19  ;;  %p1371_p5 = scmp.lt.u32.totalorder %s1557_s5, %s1597_s19 }
  0x2a   :  { %p1373_p7 = scmp.lt.u32.totalorder %s1597_s19, %s1548_s28 }
  0x2b   :  { %p1372_p6 = por %p1371_p5, %p1349_p10 }
  0x2d   :  { %p1374_p8 = por %p1373_p7, %p1372_p6 }
  0x2f   :  { %p1375_p9 = pnand %p1374_p8, %p1368_p4 }
  0x31   :  { %1378 = shalt.err (!%p1375_p9)  }
  0x32   :  { %s1379_s22 = scalar_lea.vmem %s1590_s16, 2048  ;;  %p1384_p12 = scmp.lt.s32.totalorder %s1590_s16, %s1543_s25 }
  0x33   :  { %p1612_p11 = scmp.ne.s32.totalorder %s1590_s16, %s1379_s22  ;;  %p1385_p13 = scmp.lt.s32.totalorder %s1359_s11, %s1379_s22 }
  0x35   :  { %p1620_p10 = por %p1385_p13, %p1384_p12 }
  0x37   :  { %p1387_p0 = pnand %p1620_p10, %p1612_p11 }
  0x39   :  { %1390 = shalt.err (!%p1387_p0)  }
  0x3a   :  { %53 = dma.hbm_to_vmem [thread:$0]  %s1548_s28, 2048, %s1590_s16, [#allocation3 + $0x1]  ;;  %vm141_vm1 = vcmask 64512   ;;  %v1509_v30 = vmov 0.125   ;;  %v221_v31 = vlaneseq }
  0x3b   :  { %v54_v3 = vld [vmem:[#allocation2] sm:$0xff]  ;;  %v55_v4 = vld [vmem:[#allocation2 + $0x8] sm:$0xff]  ;;  %v56_v5 = vld [vmem:[#allocation2 + $0x10] sm:$0xff] }
  0x3c   :  { %v1188_v6 = vpack.c.bf16 %v55_v4, %v54_v3  ;;  %v57_v7 = vld [vmem:[#allocation2 + $0x18] sm:$0xff]  ;;  %v58_v9 = vld [vmem:[#allocation2 + $0x20] sm:$0xff]  ;;  %v59_v10 = vld [vmem:[#allocation2 + $0x28] sm:$0xff]  ;;  %v222_v32 = vshrl.u32 %v221_v31, 7 }
  0x3d   :  { %v1191_v8 = vpack.c.bf16 %v57_v7, %v56_v5  ;;  %v1194_v11 = vpack.c.bf16 %v59_v10, %v58_v9  ;;  %v60_v12 = vld [vmem:[#allocation2 + $0x30] sm:$0xff]  ;;  %v61_v13 = vld [vmem:[#allocation2 + $0x38] sm:$0xff]  ;;  %v62_v15 = vld [vmem:[#allocation2 + $0x40] sm:$0xff] }
  0x3e   :  { %1189 = vmatpush3.bf16.msra.mxu0 %v1188_v6  ;;  %v1197_v14 = vpack.c.bf16 %v61_v13, %v60_v12  ;;  %v63_v16 = vld [vmem:[#allocation2 + $0x48] sm:$0xff]  ;;  %v64_v18 = vld [vmem:[#allocation2 + $0x50] sm:$0xff]  ;;  %v65_v19 = vld [vmem:[#allocation2 + $0x58] sm:$0xff]  ;;  %v1646_v33 = vsub.s32 0, %v222_v32 }
  0x3f   :  { %1190 = vmatprep.subr.bf16.mxu0 %v1506_v1  ;;  %v1200_v17 = vpack.c.bf16 %v63_v16, %v62_v15  ;;  %v1203_v20 = vpack.c.bf16 %v65_v19, %v64_v18  ;;  %v66_v21 = vld [vmem:[#allocation2 + $0x60] sm:$0xff]  ;;  %v67_v22 = vld [vmem:[#allocation2 + $0x68] sm:$0xff]  ;;  %v68_v24 = vld [vmem:[#allocation2 + $0x70] sm:$0xff] }
  0x40   :  { %v1206_v23 = vpack.c.bf16 %v67_v22, %v66_v21  ;;  %v69_v25 = vld [vmem:[#allocation2 + $0x78] sm:$0xff] }
  0x41   :  { %v1209_v26 = vpack.c.bf16 %v69_v25, %v68_v24 }
  0x42   :  { %1192 = vmatpush3.bf16.msra.mxu0 %v1191_v8 }
  0x43   :  { %1193 = vmatprep.subr.bf16.mxu0 %v1506_v1 }
  0x46   :  { %1195 = vmatpush3.bf16.msra.mxu0 %v1194_v11 }
  0x47   :  { %1196 = vmatprep.subr.bf16.mxu0 %v1506_v1 }
  0x4a   :  { %1198 = vmatpush3.bf16.msra.mxu0 %v1197_v14 }
  0x4b   :  { %1199 = vmatprep.subr.bf16.mxu0 %v1506_v1 }
  0x4e   :  { %1201 = vmatpush3.bf16.msra.mxu0 %v1200_v17 }
  0x4f   :  { %1202 = vmatprep.subr.bf16.mxu0 %v1506_v1 }
  0x52   :  { %1204 = vmatpush3.bf16.msra.mxu0 %v1203_v20 }
  0x53   :  { %1205 = vmatprep.subr.bf16.mxu0 %v1506_v1 }
  0x56   :  { %1207 = vmatpush3.bf16.msra.mxu0 %v1206_v23 }
  0x57   :  { %1208 = vmatprep.subr.bf16.mxu0 %v1506_v1 }
  0x5a   :  { %1210 = vmatpush3.bf16.msra.mxu0 %v1209_v26 }
  0x5d   :  { %1045 = vmatmul.mubr.f32.vlgmr.msra.gmra.mrb[0].mxu0 %v1587_v0 }
  0x5e   :  { %209 = vmatprep.mubr.f32.mxu0 %v1508_v2 }
 0x130   :  { %v136_v27 = vpop.f32.mrb[0].mxu0 }
 0x131   :  { %v140_v28 = vmul.f32 %v136_v27, %v136_v27  ;;  %v1046_v29 = vpop.f32.mrb[1].mxu0 }
 0x133   :  { %145 = vmatprep.subr.mxu0 %v140_v28 }
 0x134   :  { %146 = vmatpush1.msra.mxu0 %v136_v27 }
 0x135   :  { %920 = vmatmul.mubr.msk.f32.vlgmr.msra.gmra.mrb[2].mxu0 %vm141_vm1, %v1509_v30 }
 0x208   :  { %v211_v34 = vpop.f32.mrb[2].mxu0 }
 0x209   :  { %v216_v35 = vmul.f32 %v211_v34, %v211_v34  ;;  %v224_v36 = vrot.slane %v211_v34, %v1646_v33  ;;  %v213_v37 = vpop.f32.mrb[3].mxu0 }
 0x20b   :  { %v225_v38 = vsub.f32 %v136_v27, %v224_v36  ;;  %v217_v39 = vsub.f32 %v213_v37, %v216_v35 }
 0x20d   :  { %v218_v40 = vmax.f32 %v217_v39, 0.0 }
 0x20f   :  { %v219_v41 = vadd.f32 1e-05, %v218_v40 }
 0x211   :  { %1315 = vrsqrt.f32 %v219_v41 }
 0x21b   :  { %v1316_v42 = vpop.eup %1315 }
 0x21c   :  { %v229_v43 = vrot.slane %v1316_v42, %v1646_v33 }
 0x21e   :  { %v230_v44 = vmul.f32 %v229_v43, %v225_v38 }
 0x220   :  { %v231_v45 = vmax.f32 %v230_v44, 0.0 }
 0x221   :  { %1493 = dma.done.wait [#allocation3 + $0x1], 2048 }
 0x222   :  { %1494 = vsyncadd [#allocation3 + $0x1], 4294965248  ;;  %1211 = vmatprep.subr.bf16.mxu1 %v1506_v1  ;;  %1079 = vmatprep.mubr.msk.f32.mxu1 %vm1507_vm0, %v1508_v2  ;;  %s1656_s28 = scalar_lea.hbm %s1780_s1, 6144  ;;  %p1395_p2 = scmp.lt.u32.totalorder %s1597_s19, %s1780_s1 }
 0x223   :  { %p1393_p1 = scmp.ne.s32.totalorder %s1597_s19, %s1656_s28  ;;  %p1396_p4 = scmp.lt.u32.totalorder %s1557_s5, %s1656_s28 }
 0x224   :  { %p1398_p6 = scmp.lt.u32.totalorder %s1656_s28, %s1597_s19 }
 0x225   :  { %p1397_p5 = por %p1396_p4, %p1395_p2 }
 0x227   :  { %p1399_p7 = por %p1398_p6, %p1397_p5 }
 0x229   :  { %p1400_p8 = pnand %p1399_p7, %p1393_p1 }
 0x22b   :  { %1403 = shalt.err (!%p1400_p8)  }
 0x22c   :  { %1415 = shalt.err (!%p1577_p3)  }
 0x22d   :  { %245 = dma.hbm_to_vmem [thread:$0]  %s1597_s19, 2048, %s1543_s25, [#allocation3]  ;;  %397 = vmatprep.mubr.f32.mxu0 %v1508_v2 }
 0x22e   :  { %v246_v46 = vld [vmem:[#allocation2 + $0x80] sm:$0xff]  ;;  %v247_v47 = vld [vmem:[#allocation2 + $0x88] sm:$0xff]  ;;  %v248_v48 = vld [vmem:[#allocation2 + $0x90] sm:$0xff] }
 0x22f   :  { %v1212_v49 = vpack.c.bf16 %v247_v47, %v246_v46  ;;  %v249_v50 = vld [vmem:[#allocation2 + $0x98] sm:$0xff]  ;;  %v250_v52 = vld [vmem:[#allocation2 + $0xa0] sm:$0xff]  ;;  %v251_v53 = vld [vmem:[#allocation2 + $0xa8] sm:$0xff] }
 0x230   :  { %v1215_v51 = vpack.c.bf16 %v249_v50, %v248_v48  ;;  %v1218_v54 = vpack.c.bf16 %v251_v53, %v250_v52  ;;  %v252_v55 = vld [vmem:[#allocation2 + $0xb0] sm:$0xff]  ;;  %v253_v56 = vld [vmem:[#allocation2 + $0xb8] sm:$0xff]  ;;  %v254_v58 = vld [vmem:[#allocation2 + $0xc0] sm:$0xff] }
 0x231   :  { %1213 = vmatpush3.bf16.msra.mxu1 %v1212_v49  ;;  %v1221_v57 = vpack.c.bf16 %v253_v56, %v252_v55  ;;  %v255_v59 = vld [vmem:[#allocation2 + $0xc8] sm:$0xff]  ;;  %v256_v61 = vld [vmem:[#allocation2 + $0xd0] sm:$0xff]  ;;  %v257_v62 = vld [vmem:[#allocation2 + $0xd8] sm:$0xff] }
 0x232   :  { %1214 = vmatprep.subr.bf16.mxu1 %v1506_v1  ;;  %v1224_v60 = vpack.c.bf16 %v255_v59, %v254_v58  ;;  %v1227_v63 = vpack.c.bf16 %v257_v62, %v256_v61  ;;  %v258_v0 = vld [vmem:[#allocation2 + $0xe0] sm:$0xff]  ;;  %v259_v3 = vld [vmem:[#allocation2 + $0xe8] sm:$0xff]  ;;  %v260_v5 = vld [vmem:[#allocation2 + $0xf0] sm:$0xff] }
 0x233   :  { %v1230_v4 = vpack.c.bf16 %v259_v3, %v258_v0  ;;  %v261_v6 = vld [vmem:[#allocation2 + $0xf8] sm:$0xff] }
 0x234   :  { %v1233_v7 = vpack.c.bf16 %v261_v6, %v260_v5 }
 0x235   :  { %1216 = vmatpush3.bf16.msra.mxu1 %v1215_v51 }
 0x236   :  { %1217 = vmatprep.subr.bf16.mxu1 %v1506_v1 }
 0x239   :  { %1219 = vmatpush3.bf16.msra.mxu1 %v1218_v54 }
 0x23a   :  { %1220 = vmatprep.subr.bf16.mxu1 %v1506_v1 }
 0x23d   :  { %1222 = vmatpush3.bf16.msra.mxu1 %v1221_v57 }
 0x23e   :  { %1223 = vmatprep.subr.bf16.mxu1 %v1506_v1 }
 0x241   :  { %1225 = vmatpush3.bf16.msra.mxu1 %v1224_v60 }
 0x242   :  { %1226 = vmatprep.subr.bf16.mxu1 %v1506_v1 }
 0x245   :  { %1228 = vmatpush3.bf16.msra.mxu1 %v1227_v63 }
 0x246   :  { %1229 = vmatprep.subr.bf16.mxu1 %v1506_v1 }
 0x249   :  { %1231 = vmatpush3.bf16.msra.mxu1 %v1230_v4 }
 0x24a   :  { %1232 = vmatprep.subr.bf16.mxu1 %v1506_v1 }
 0x24d   :  { %1234 = vmatpush3.bf16.msra.mxu1 %v1233_v7 }
 0x250   :  { %1080 = vmatmul.mubr.f32.vlgmr.msra.gmra.mrb[0].mxu1 %v231_v45 }
 0x323   :  { %v328_v8 = vpop.f32.mrb[0].mxu1 }
 0x324   :  { %v1081_v9 = vpop.f32.mrb[1].mxu1  ;;  %v332_v10 = vmul.f32 %v328_v8, %v328_v8 }
 0x326   :  { %333 = vmatprep.subr.mxu0 %v332_v10 }
 0x327   :  { %334 = vmatpush1.msra.mxu0 %v328_v8 }
 0x328   :  { %921 = vmatmul.mubr.msk.f32.vlgmr.msra.gmra.mrb[4].mxu0 %vm141_vm1, %v1509_v30 }
 0x3fb   :  { %v399_v11 = vpop.f32.mrb[4].mxu0 }
 0x3fc   :  { %v404_v12 = vmul.f32 %v399_v11, %v399_v11  ;;  %v412_v13 = vrot.slane %v399_v11, %v1646_v33  ;;  %v401_v14 = vpop.f32.mrb[5].mxu0 }
 0x3fe   :  { %v413_v15 = vsub.f32 %v328_v8, %v412_v13  ;;  %v405_v16 = vsub.f32 %v401_v14, %v404_v12 }
 0x400   :  { %v406_v17 = vmax.f32 %v405_v16, 0.0 }
 0x402   :  { %v407_v18 = vadd.f32 1e-05, %v406_v17 }
 0x404   :  { %1317 = vrsqrt.f32 %v407_v18 }
 0x40e   :  { %v1318_v19 = vpop.eup %1317 }
 0x40f   :  { %v417_v20 = vrot.slane %v1318_v19, %v1646_v33 }
 0x411   :  { %v418_v21 = vmul.f32 %v417_v20, %v413_v15 }
 0x413   :  { %v419_v22 = vmax.f32 %v418_v21, 0.0 }
 0x414   :  { %1495 = dma.done.wait [#allocation3], 2048 }
 0x415   :  { %1496 = vsyncadd [#allocation3], 4294965248  ;;  %1235 = vmatprep.subr.bf16.mxu1 %v1506_v1  ;;  %1114 = vmatprep.mubr.msk.f32.mxu1 %vm1507_vm0, %v1508_v2  ;;  %s1690_s6 = scalar_lea.hbm %s1780_s1, 8192  ;;  %p1420_p12 = scmp.lt.u32.totalorder %s1656_s28, %s1780_s1 }
 0x416   :  { %p1418_p9 = scmp.ne.s32.totalorder %s1656_s28, %s1690_s6  ;;  %p1421_p13 = scmp.lt.u32.totalorder %s1557_s5, %s1690_s6 }
 0x417   :  { %p1423_p2 = scmp.lt.u32.totalorder %s1690_s6, %s1656_s28 }
 0x418   :  { %p1422_p1 = por %p1421_p13, %p1420_p12 }
 0x41a   :  { %p1424_p4 = por %p1423_p2, %p1422_p1 }
 0x41c   :  { %p1425_p5 = pnand %p1424_p4, %p1418_p9 }
 0x41e   :  { %1428 = shalt.err (!%p1425_p5)  }
 0x41f   :  { %1440 = shalt.err (!%p1387_p0)  }
 0x420   :  { %433 = dma.hbm_to_vmem [thread:$0]  %s1656_s28, 2048, %s1590_s16, [#allocation3 + $0x1]  ;;  %585 = vmatprep.mubr.f32.mxu0 %v1508_v2 }
 0x421   :  { %v434_v23 = vld [vmem:[#allocation2] sm:$0xff]  ;;  %v435_v24 = vld [vmem:[#allocation2 + $0x8] sm:$0xff]  ;;  %v436_v25 = vld [vmem:[#allocation2 + $0x10] sm:$0xff] }
 0x422   :  { %v1236_v26 = vpack.c.bf16 %v435_v24, %v434_v23  ;;  %v437_v27 = vld [vmem:[#allocation2 + $0x18] sm:$0xff]  ;;  %v438_v29 = vld [vmem:[#allocation2 + $0x20] sm:$0xff]  ;;  %v439_v31 = vld [vmem:[#allocation2 + $0x28] sm:$0xff] }
 0x423   :  { %v1239_v28 = vpack.c.bf16 %v437_v27, %v436_v25  ;;  %v1242_v32 = vpack.c.bf16 %v439_v31, %v438_v29  ;;  %v440_v34 = vld [vmem:[#allocation2 + $0x30] sm:$0xff]  ;;  %v441_v35 = vld [vmem:[#allocation2 + $0x38] sm:$0xff]  ;;  %v442_v37 = vld [vmem:[#allocation2 + $0x40] sm:$0xff] }
 0x424   :  { %1237 = vmatpush3.bf16.msra.mxu1 %v1236_v26  ;;  %v1245_v36 = vpack.c.bf16 %v441_v35, %v440_v34  ;;  %v443_v38 = vld [vmem:[#allocation2 + $0x48] sm:$0xff]  ;;  %v444_v40 = vld [vmem:[#allocation2 + $0x50] sm:$0xff]  ;;  %v445_v41 = vld [vmem:[#allocation2 + $0x58] sm:$0xff] }
 0x425   :  { %1238 = vmatprep.subr.bf16.mxu1 %v1506_v1  ;;  %v1248_v39 = vpack.c.bf16 %v443_v38, %v442_v37  ;;  %v1251_v42 = vpack.c.bf16 %v445_v41, %v444_v40  ;;  %v446_v43 = vld [vmem:[#allocation2 + $0x60] sm:$0xff]  ;;  %v447_v44 = vld [vmem:[#allocation2 + $0x68] sm:$0xff]  ;;  %v448_v46 = vld [vmem:[#allocation2 + $0x70] sm:$0xff] }
 0x426   :  { %v1254_v45 = vpack.c.bf16 %v447_v44, %v446_v43  ;;  %v449_v47 = vld [vmem:[#allocation2 + $0x78] sm:$0xff] }
 0x427   :  { %v1257_v48 = vpack.c.bf16 %v449_v47, %v448_v46 }
 0x428   :  { %1240 = vmatpush3.bf16.msra.mxu1 %v1239_v28 }
 0x429   :  { %1241 = vmatprep.subr.bf16.mxu1 %v1506_v1 }
 0x42c   :  { %1243 = vmatpush3.bf16.msra.mxu1 %v1242_v32 }
 0x42d   :  { %1244 = vmatprep.subr.bf16.mxu1 %v1506_v1 }
 0x430   :  { %1246 = vmatpush3.bf16.msra.mxu1 %v1245_v36 }
 0x431   :  { %1247 = vmatprep.subr.bf16.mxu1 %v1506_v1 }
 0x434   :  { %1249 = vmatpush3.bf16.msra.mxu1 %v1248_v39 }
 0x435   :  { %1250 = vmatprep.subr.bf16.mxu1 %v1506_v1 }
 0x438   :  { %1252 = vmatpush3.bf16.msra.mxu1 %v1251_v42 }
 0x439   :  { %1253 = vmatprep.subr.bf16.mxu1 %v1506_v1 }
 0x43c   :  { %1255 = vmatpush3.bf16.msra.mxu1 %v1254_v45 }
 0x43d   :  { %1256 = vmatprep.subr.bf16.mxu1 %v1506_v1 }
 0x440   :  { %1258 = vmatpush3.bf16.msra.mxu1 %v1257_v48 }
 0x443   :  { %1115 = vmatmul.mubr.f32.vlgmr.msra.gmra.mrb[2].mxu1 %v419_v22 }
 0x516   :  { %v516_v49 = vpop.f32.mrb[2].mxu1 }
 0x517   :  { %v1116_v50 = vpop.f32.mrb[3].mxu1  ;;  %v520_v51 = vmul.f32 %v516_v49, %v516_v49 }
 0x519   :  { %521 = vmatprep.subr.mxu0 %v520_v51 }
 0x51a   :  { %522 = vmatpush1.msra.mxu0 %v516_v49 }
 0x51b   :  { %922 = vmatmul.mubr.msk.f32.vlgmr.msra.gmra.mrb[6].mxu0 %vm141_vm1, %v1509_v30 }
 0x5ee   :  { %v587_v52 = vpop.f32.mrb[6].mxu0 }
 0x5ef   :  { %v592_v53 = vmul.f32 %v587_v52, %v587_v52  ;;  %v600_v54 = vrot.slane %v587_v52, %v1646_v33  ;;  %v589_v55 = vpop.f32.mrb[7].mxu0 }
 0x5f1   :  { %v601_v56 = vsub.f32 %v516_v49, %v600_v54  ;;  %v593_v57 = vsub.f32 %v589_v55, %v592_v53 }
 0x5f3   :  { %v594_v58 = vmax.f32 %v593_v57, 0.0 }
 0x5f5   :  { %v595_v59 = vadd.f32 1e-05, %v594_v58 }
 0x5f7   :  { %1319 = vrsqrt.f32 %v595_v59 }
 0x601   :  { %v1320_v60 = vpop.eup %1319 }
 0x602   :  { %v605_v61 = vrot.slane %v1320_v60, %v1646_v33 }
 0x604   :  { %v606_v62 = vmul.f32 %v605_v61, %v601_v56 }
 0x606   :  { %v607_v63 = vmax.f32 %v606_v62, 0.0 }
 0x607   :  { %1497 = dma.done.wait [#allocation3 + $0x1], 2048 }
 0x608   :  { %1498 = vsyncadd [#allocation3 + $0x1], 4294965248  ;;  %1259 = vmatprep.subr.bf16.mxu0 %v1506_v1  ;;  %1149 = vmatprep.mubr.msk.f32.mxu0 %vm1507_vm0, %v1508_v2  ;;  %p1443_p11 = scmp.ne.s32.totalorder %s1690_s6, %s1557_s5  ;;  %p1445_p10 = scmp.lt.u32.totalorder %s1690_s6, %s1780_s1 }
 0x609   :  { %p1446_p0 = scmp.lt.u32.totalorder %s1557_s5, %s1557_s5 }
 0x60b   :  { %p1447_p6 = por %p1446_p0, %p1445_p10 }
 0x60d   :  { %p1449_p7 = por %p1447_p6, %p1421_p13 }
 0x60f   :  { %p1450_p8 = pnand %p1449_p7, %p1443_p11 }
 0x611   :  { %1453 = shalt.err (!%p1450_p8)  }
 0x612   :  { %1465 = shalt.err (!%p1577_p3)  }
 0x613   :  { %621 = dma.hbm_to_vmem [thread:$0]  %s1690_s6, 2048, %s1543_s25, [#allocation3] }
 0x614   :  { %v622_v0 = vld [vmem:[#allocation2 + $0x80] sm:$0xff]  ;;  %v623_v3 = vld [vmem:[#allocation2 + $0x88] sm:$0xff]  ;;  %v624_v4 = vld [vmem:[#allocation2 + $0x90] sm:$0xff] }
 0x615   :  { %v1260_v5 = vpack.c.bf16 %v623_v3, %v622_v0  ;;  %v625_v6 = vld [vmem:[#allocation2 + $0x98] sm:$0xff]  ;;  %v626_v8 = vld [vmem:[#allocation2 + $0xa0] sm:$0xff]  ;;  %v627_v9 = vld [vmem:[#allocation2 + $0xa8] sm:$0xff] }
 0x616   :  { %v1263_v7 = vpack.c.bf16 %v625_v6, %v624_v4  ;;  %v1266_v10 = vpack.c.bf16 %v627_v9, %v626_v8  ;;  %v628_v11 = vld [vmem:[#allocation2 + $0xb0] sm:$0xff]  ;;  %v629_v12 = vld [vmem:[#allocation2 + $0xb8] sm:$0xff]  ;;  %v630_v14 = vld [vmem:[#allocation2 + $0xc0] sm:$0xff] }
 0x617   :  { %1261 = vmatpush3.bf16.msra.mxu0 %v1260_v5  ;;  %v1269_v13 = vpack.c.bf16 %v629_v12, %v628_v11  ;;  %v631_v15 = vld [vmem:[#allocation2 + $0xc8] sm:$0xff]  ;;  %v632_v17 = vld [vmem:[#allocation2 + $0xd0] sm:$0xff]  ;;  %v633_v18 = vld [vmem:[#allocation2 + $0xd8] sm:$0xff] }
 0x618   :  { %1262 = vmatprep.subr.bf16.mxu0 %v1506_v1  ;;  %v1272_v16 = vpack.c.bf16 %v631_v15, %v630_v14  ;;  %v1275_v19 = vpack.c.bf16 %v633_v18, %v632_v17  ;;  %v634_v20 = vld [vmem:[#allocation2 + $0xe0] sm:$0xff]  ;;  %v635_v21 = vld [vmem:[#allocation2 + $0xe8] sm:$0xff]  ;;  %v636_v23 = vld [vmem:[#allocation2 + $0xf0] sm:$0xff] }
 0x619   :  { %v1278_v22 = vpack.c.bf16 %v635_v21, %v634_v20  ;;  %v637_v24 = vld [vmem:[#allocation2 + $0xf8] sm:$0xff] }
 0x61a   :  { %v1281_v25 = vpack.c.bf16 %v637_v24, %v636_v23 }
 0x61b   :  { %1264 = vmatpush3.bf16.msra.mxu0 %v1263_v7 }
 0x61c   :  { %1265 = vmatprep.subr.bf16.mxu0 %v1506_v1 }
 0x61f   :  { %1267 = vmatpush3.bf16.msra.mxu0 %v1266_v10 }
 0x620   :  { %1268 = vmatprep.subr.bf16.mxu0 %v1506_v1 }
 0x623   :  { %1270 = vmatpush3.bf16.msra.mxu0 %v1269_v13 }
 0x624   :  { %1271 = vmatprep.subr.bf16.mxu0 %v1506_v1 }
 0x627   :  { %1273 = vmatpush3.bf16.msra.mxu0 %v1272_v16 }
 0x628   :  { %1274 = vmatprep.subr.bf16.mxu0 %v1506_v1 }
 0x62b   :  { %1276 = vmatpush3.bf16.msra.mxu0 %v1275_v19 }
 0x62c   :  { %1277 = vmatprep.subr.bf16.mxu0 %v1506_v1 }
 0x62f   :  { %1279 = vmatpush3.bf16.msra.mxu0 %v1278_v22 }
 0x630   :  { %1280 = vmatprep.subr.bf16.mxu0 %v1506_v1 }
 0x633   :  { %1282 = vmatpush3.bf16.msra.mxu0 %v1281_v25 }
 0x636   :  { %1150 = vmatmul.mubr.f32.vlgmr.msra.gmra.mrb[8].mxu0 %v607_v63 }
 0x637   :  { %773 = vmatprep.mubr.f32.mxu0 %v1508_v2 }
 0x709   :  { %v704_v26 = vpop.f32.mrb[8].mxu0 }
 0x70a   :  { %v708_v27 = vmul.f32 %v704_v26, %v704_v26  ;;  %v1151_v28 = vpop.f32.mrb[9].mxu0 }
 0x70c   :  { %709 = vmatprep.subr.mxu0 %v708_v27 }
 0x70d   :  { %710 = vmatpush1.msra.mxu0 %v704_v26 }
 0x70e   :  { %923 = vmatmul.mubr.msk.f32.vlgmr.msra.gmra.mrb[10].mxu0 %vm141_vm1, %v1509_v30 }
 0x7e1   :  { %v775_v29 = vpop.f32.mrb[10].mxu0 }
 0x7e2   :  { %v780_v31 = vmul.f32 %v775_v29, %v775_v29  ;;  %v788_v32 = vrot.slane %v775_v29, %v1646_v33  ;;  %v777_v34 = vpop.f32.mrb[11].mxu0 }
 0x7e4   :  { %v789_v35 = vsub.f32 %v704_v26, %v788_v32  ;;  %v781_v36 = vsub.f32 %v777_v34, %v780_v31 }
 0x7e6   :  { %v782_v37 = vmax.f32 %v781_v36, 0.0 }
 0x7e8   :  { %v783_v38 = vadd.f32 1e-05, %v782_v37 }
 0x7ea   :  { %1321 = vrsqrt.f32 %v783_v38 }
 0x7f4   :  { %v1322_v39 = vpop.eup %1321 }
 0x7f5   :  { %v793_v40 = vrot.slane %v1322_v39, %v1646_v33 }
 0x7f7   :  { %v794_v41 = vmul.f32 %v793_v40, %v789_v35 }
 0x7f9   :  { %v795_v42 = vmax.f32 %v794_v41, 0.0 }
 0x7fa   :  { %1499 = dma.done.wait [#allocation3], 2048 }
 0x7fb   :  { %1500 = vsyncadd [#allocation3], 4294965248  ;;  %1283 = vmatprep.subr.bf16.mxu1 %v1506_v1  ;;  %1184 = vmatprep.mubr.msk.f32.mxu1 %vm1507_vm0, %v1508_v2  ;;  %v798_v30 = vld [vmem:[#allocation2] sm:$0xff]  ;;  %v799_v43 = vld [vmem:[#allocation2 + $0x8] sm:$0xff]  ;;  %s1510_s5 = smov [#allocation7]  }
 0x7fc   :  { %v800_v44 = vld [vmem:[#allocation2 + $0x10] sm:$0xff]  ;;  %v1284_v45 = vpack.c.bf16 %v799_v43, %v798_v30  ;;  %v801_v46 = vld [vmem:[#allocation2 + $0x18] sm:$0xff]  ;;  %v802_v48 = vld [vmem:[#allocation2 + $0x20] sm:$0xff]  ;;  %s898_s11 = sshll.u32 %s1510_s5, 4  ;;  %s899_s11 = int_to_ptr.vmem [resolvable:$true] %s898_s11 }
 0x7fd   :  { %v1287_v47 = vpack.c.bf16 %v801_v46, %v800_v44  ;;  %v803_v33 = vld [vmem:[#allocation2 + $0x28] sm:$0xff]  ;;  %v804_v50 = vld [vmem:[#allocation2 + $0x30] sm:$0xff]  ;;  %v805_v51 = vld [vmem:[#allocation2 + $0x38] sm:$0xff]  ;;  %s1467_s12 = scalar_lea.vmem %s899_s11, 128  ;;  %p1472_p9 = scmp.lt.s32.totalorder %s899_s11, %s899_s11 }
 0x7fe   :  { %1285 = vmatpush3.bf16.msra.mxu1 %v1284_v45  ;;  %v1290_v49 = vpack.c.bf16 %v803_v33, %v802_v48  ;;  %v1293_v52 = vpack.c.bf16 %v805_v51, %v804_v50  ;;  %v806_v2 = vld [vmem:[#allocation2 + $0x40] sm:$0xff]  ;;  %v807_v53 = vld [vmem:[#allocation2 + $0x48] sm:$0xff]  ;;  %v808_v55 = vld [vmem:[#allocation2 + $0x50] sm:$0xff]  ;;  %p1468_p3 = scmp.ne.s32.totalorder %s899_s11, %s1467_s12  ;;  %p1473_p12 = scmp.lt.s32.totalorder %s1467_s12, %s1467_s12 }
 0x7ff   :  { %1286 = vmatprep.subr.bf16.mxu1 %v1506_v1  ;;  %v1296_v54 = vpack.c.bf16 %v807_v53, %v806_v2  ;;  %v809_v56 = vld [vmem:[#allocation2 + $0x58] sm:$0xff]  ;;  %v810_v58 = vld [vmem:[#allocation2 + $0x60] sm:$0xff]  ;;  %v811_v59 = vld [vmem:[#allocation2 + $0x68] sm:$0xff] }
 0x800   :  { %v1299_v57 = vpack.c.bf16 %v809_v56, %v808_v55  ;;  %v1302_v60 = vpack.c.bf16 %v811_v59, %v810_v58  ;;  %v812_v61 = vld [vmem:[#allocation2 + $0x70] sm:$0xff]  ;;  %v813_v62 = vld [vmem:[#allocation2 + $0x78] sm:$0xff]  ;;  %v924_v0 = vld [vmem:[%s1781_s2] ss:$0 sm:$0xff]  ;;  %p1474_p13 = por %p1473_p12, %p1472_p9 }
 0x801   :  { %v1305_v63 = vpack.c.bf16 %v813_v62, %v812_v61 }
 0x802   :  { %1288 = vmatpush3.bf16.msra.mxu1 %v1287_v47  ;;  %p1475_p1 = pnand %p1474_p13, %p1468_p3 }
 0x803   :  { %1289 = vmatprep.subr.bf16.mxu1 %v1506_v1 }
 0x806   :  { %1291 = vmatpush3.bf16.msra.mxu1 %v1290_v49 }
 0x807   :  { %1292 = vmatprep.subr.bf16.mxu1 %v1506_v1 }
 0x80a   :  { %1294 = vmatpush3.bf16.msra.mxu1 %v1293_v52 }
 0x80b   :  { %1295 = vmatprep.subr.bf16.mxu1 %v1506_v1 }
 0x80e   :  { %1297 = vmatpush3.bf16.msra.mxu1 %v1296_v54 }
 0x80f   :  { %1298 = vmatprep.subr.bf16.mxu1 %v1506_v1 }
 0x812   :  { %1300 = vmatpush3.bf16.msra.mxu1 %v1299_v57 }
 0x813   :  { %1301 = vmatprep.subr.bf16.mxu1 %v1506_v1 }
 0x816   :  { %1303 = vmatpush3.bf16.msra.mxu1 %v1302_v60 }
 0x817   :  { %1304 = vmatprep.subr.bf16.mxu1 %v1506_v1 }
 0x81a   :  { %1306 = vmatpush3.bf16.msra.mxu1 %v1305_v63 }
 0x81d   :  { %1185 = vmatmul.mubr.f32.vlgmr.msra.gmra.mrb[4].mxu1 %v795_v42 }
 0x8f0   :  { %v887_v3 = vpop.f32.mrb[4].mxu1 }
 0x8f1   :  { %v888_v4 = vadd.f32 %v924_v0, %v887_v3  ;;  %v1186_v5 = vpop.f32.mrb[5].mxu1 }
 0x8f3   :  { %891 = vst [vmem:[#allocation7] sm:$0xff] %v888_v4 }
 0x8f4   :  { %1478 = shalt.err (!%p1475_p1)
}
 0x8f5   :  { %s1479_s15 = scalar_lea.hbm %s1782_s3, 128 }
 0x8f6   :  { %p1480_p2 = scmp.ne.s32.totalorder %s1782_s3, %s1479_s15  ;;  %p1483_p4 = scmp.lt.u32.totalorder %s1479_s15, %s1782_s3 }
 0x8f8   :  { %p1485_p5 = pnand %p1483_p4, %p1480_p2 }
 0x8fa   :  { %1488 = shalt.err (!%p1485_p5)
}
 0x8fb   :  { %901 = dma.vmem_to_hbm [thread:$0]  %s899_s11, 128, %s1782_s3, [#allocation6]  }
 0x8fc   :  { %1501 = dma.done.wait [#allocation6], 128  }
 0x8fd   :  { %1502 = vsyncadd [#allocation6], 4294967168 }
 0x8fe   :  { %905 = vsyncpa [#allocation5], 1 }
 0x8ff   :  { %906 = vsyncpa [#allocation6], 1 }
 0x900   :  { %907 = vsyncmov [#allocation3] }
 0x903   :  { %s908_s21 = vpop.sfrf %907 }
 0x904   :  { %p925_p11 = scmp.ne.s32.totalorder %s908_s21, 0 }
 0x906   :  { %912 = shalt.err (%p925_p11)  }
 0x907   :  { %914 = vsyncmov [#allocation3 + $0x1] }
 0x90a   :  { %s915_s22 = vpop.sfrf %914 }
 0x90b   :  { %p926_p10 = scmp.ne.s32.totalorder %s915_s22, 0 }
 0x90d   :  { %919 = shalt.err (%p926_p10)  }

</bundles_post_ra>
